<compile_context>
chip_gen: v6e
topology: v6e:2x2x1
jax: 0.10.0
libtpu: 0.0.40
codegen_flags: <defaults>
</compile_context>

<pallas_src>
import jax
import jax.numpy as jnp
from jax import lax
from jax.experimental import pallas as pl
from jax.experimental.pallas import tpu as pltpu


def _round_up(x, m):
    return (x + m - 1) // m * m


def conv_bn_silu_kernel(x_ref, w_ref, b_ref, o_ref):
    # x_ref: (1, TL, K*C_in)    im2col'd activation tile (compute dtype)
    # w_ref: (K*C_in, C_out_p)  conv weight with BN scale folded in (compute dtype)
    # b_ref: (1, C_out_p)       folded BN bias (f32)
    # o_ref: (1, TL, C_out_p)   output tile, lane-dense (C_out_p % 128 == 0)
    y = jnp.dot(x_ref[0], w_ref[...], preferred_element_type=jnp.float32)
    y = y + b_ref[...]                                    # BatchNorm (folded, eval)
    o_ref[0] = (y * jax.nn.sigmoid(y)).astype(o_ref.dtype)  # SiLU (f32 epilogue)


def _pick_tile_l(l_rounded, kc, c_out_p, in_bytes, out_bytes,
                 budget_bytes=24 * 1024 * 1024):
    """Largest L tile (multiple of 8) whose double-buffered working set fits."""
    weight_bytes = 2 * kc * c_out_p * in_bytes + 2 * c_out_p * 4
    for tl in (2048, 1024, 512, 256, 128, 64, 32, 16, 8):
        if tl > l_rounded:
            continue
        est = 2 * tl * kc * in_bytes + 2 * tl * c_out_p * out_bytes + weight_bytes
        if est <= budget_bytes:
            return tl
    return 8


def conv_bn_silu(x_ncw, weight, gamma, beta, running_mean, running_var,
                 eps=1e-5, use_bnorm=True, compute_dtype=jnp.bfloat16):
    """x_ncw: (N, C_in, L); weight: (C_out, C_in, K) (PyTorch Conv1d layout)."""
    N, c_in, L = x_ncw.shape
    c_out, _, K = weight.shape

    # padding='same', stride=1 -> same rule PyTorch uses (left = total // 2)
    total_pad = K - 1
    pad_l = total_pad // 2
    pad_r = total_pad - pad_l

    # ---- BatchNorm (eval) folded into per-channel scale / bias ---------------
    if use_bnorm:
        scale = gamma / jnp.sqrt(running_var + eps)
        bias = beta - running_mean * scale
    else:
        scale = jnp.ones((c_out,), jnp.float32)
        bias = jnp.zeros((c_out,), jnp.float32)

    # ---- weights: (C_out, C_in, K) -> (K*C_in, C_out); BN scale folded in ----
    kc = K * c_in
    w_col = jnp.transpose(weight, (2, 1, 0)).reshape(kc, c_out)
    w_col = w_col * scale[None, :]

    # ---- lane-dense output channels (pad C_out up to a multiple of 128) ------
    c_out_p = _round_up(c_out, 128)
    if c_out_p != c_out:
        w_col = jnp.pad(w_col, ((0, 0), (0, c_out_p - c_out)))
        bias = jnp.pad(bias, (0, c_out_p - c_out))
    w_col = w_col.astype(compute_dtype)
    bias = bias.reshape(1, c_out_p).astype(jnp.float32)

    # ---- im2col: (N, L, K*C_in) so the conv is a single deep matmul ----------
    x_nlc = jnp.transpose(x_ncw, (0, 2, 1))                    # (N, L, C_in)
    x_pad = jnp.pad(x_nlc, ((0, 0), (pad_l, pad_r), (0, 0)))   # (N, L+K-1, C_in)
    x_col = jnp.concatenate([x_pad[:, k:k + L, :] for k in range(K)], axis=-1)

    # ---- L tiling (VMEM-budgeted; multiple of 8 sublanes) --------------------
    in_b = jnp.dtype(compute_dtype).itemsize
    out_b = jnp.dtype(x_ncw.dtype).itemsize
    tl = _pick_tile_l(_round_up(L, 8), kc, c_out_p, in_b, out_b)
    l_t = _round_up(L, tl)
    if l_t != L:
        x_col = jnp.pad(x_col, ((0, 0), (0, l_t - L), (0, 0)))
    x_col = x_col.astype(compute_dtype)

    grid = (N, l_t // tl)
    out_nlc = pl.pallas_call(
        conv_bn_silu_kernel,
        out_shape=jax.ShapeDtypeStruct((N, l_t, c_out_p), x_ncw.dtype),
        grid_spec=pltpu.PrefetchScalarGridSpec(
            num_scalar_prefetch=0,
            grid=grid,
            in_specs=[
                # NOTE: raise to pipeline_mode=pl.Buffered(3) if profiling shows
                # exposed DMA (short per-tile compute at small C).
                pl.BlockSpec((1, tl, kc), lambda n, t: (n, t, 0)),
                pl.BlockSpec((kc, c_out_p), lambda n, t: (0, 0)),   # VMEM-resident
                pl.BlockSpec((1, c_out_p), lambda n, t: (0, 0)),
            ],
            out_specs=pl.BlockSpec((1, tl, c_out_p), lambda n, t: (n, t, 0)),
        ),
        compiler_params=pltpu.CompilerParams(
            # No reduction axis (single im2col matmul) -> both axes parallel,
            # so v7x's two TensorCores get work even when N is small/odd.
            dimension_semantics=("parallel", "parallel"),
            # Explicit scoped-VMEM budget, sized for v7x's 64 MiB physical VMEM.
            vmem_limit_bytes=48 * 1024 * 1024,
        ),
    )(x_col, w_col, bias)

    out_nlc = out_nlc[:, :L, :c_out]                 # drop L / C_out padding
    return jnp.transpose(out_nlc, (0, 2, 1))         # (N, C_out, L)


def conv_bn_silu_ref(x_ncw, weight, gamma, beta, running_mean, running_var,
                     eps=1e-5):
    """Pure-JAX reference (matches torch Conv1d / BatchNorm1d-eval / SiLU)."""
    K = weight.shape[2]
    total_pad = K - 1
    pad_l = total_pad // 2
    pad_r = total_pad - pad_l
    y = lax.conv_general_dilated(
        x_ncw, weight, window_strides=(1,), padding=[(pad_l, pad_r)],
        dimension_numbers=("NCH", "OIH", "NCH"))
    scale = (gamma / jnp.sqrt(running_var + eps))[None, :, None]
    bias = (beta - running_mean * gamma / jnp.sqrt(running_var + eps))[None, :, None]
    y = y * scale + bias
    return y * jax.nn.sigmoid(y)


if __name__ == "__main__":
    key = jax.random.PRNGKey(0)
    k_x, k_w, k_g, k_b, k_m, k_v = jax.random.split(key, 6)

    N, C_IN, C_OUT, L, KSIZE = 2, 4, 8, 16, 3

    x = jax.random.normal(k_x, (N, C_IN, L), dtype=jnp.float32)
    # nn.Conv1d(bias=False) weight: (C_out, C_in, K)
    weight = 0.1 * jax.random.normal(k_w, (C_OUT, C_IN, KSIZE), dtype=jnp.float32)
    # nn.BatchNorm1d(C_out) params/buffers (deterministic, non-trivial)
    gamma = 1.0 + 0.1 * jax.random.normal(k_g, (C_OUT,), dtype=jnp.float32)
    beta = 0.1 * jax.random.normal(k_b, (C_OUT,), dtype=jnp.float32)
    running_mean = 0.05 * jax.random.normal(k_m, (C_OUT,), dtype=jnp.float32)
    running_var = 1.0 + 0.1 * jax.nn.softplus(
        jax.random.normal(k_v, (C_OUT,), dtype=jnp.float32))

    ref = conv_bn_silu_ref(x, weight, gamma, beta, running_mean, running_var)

    # f32 matmul path: exact-precision check.
    out_f32 = conv_bn_silu(x, weight, gamma, beta, running_mean, running_var,
                           compute_dtype=jnp.float32)
    out_f32 = jax.block_until_ready(out_f32)
    assert out_f32.shape == (N, C_OUT, L), out_f32.shape
    assert jnp.allclose(out_f32, ref, atol=1e-5, rtol=1e-5), "f32 mismatch vs ref"

    # bf16 matmul path (default; f32 accumulation + f32 epilogue): loose check.
    out_bf16 = conv_bn_silu(x, weight, gamma, beta, running_mean, running_var)
    out_bf16 = jax.block_until_ready(out_bf16)
    assert out_bf16.shape == (N, C_OUT, L), out_bf16.shape
    assert jnp.allclose(out_bf16, ref, atol=5e-2, rtol=5e-2), "bf16 mismatch vs ref"

    print("KERNEL_OK")
</pallas_src>

<mosaic_0001>
module attributes {stable_mosaic.version = 11 : i64} {
  func.func @conv_bn_silu_kernel(%arg0: i32, %arg1: i32, %arg2: memref<1x16x12xf32, #tpu.memory_space<vmem>>, %arg3: memref<12x128xf32, #tpu.memory_space<vmem>>, %arg4: memref<1x128xf32, #tpu.memory_space<vmem>>, %arg5: memref<1x16x128xf32, #tpu.memory_space<vmem>>) attributes {dimension_semantics = [#tpu.dimension_semantics<parallel>, #tpu.dimension_semantics<parallel>], iteration_bounds = array<i64: 2, 1>, scalar_prefetch = 0 : i64, scratch_operands = 0 : i64, tpu.core_type = #tpu.core_type<tc>, window_params = [{transform_indices = @transform_0, window_bounds = array<i64: 1, 16, 12>}, {pipeline_mode = #tpu.pipeline_mode<synchronous>, transform_indices = @transform_1, window_bounds = array<i64: 12, 128>}, {pipeline_mode = #tpu.pipeline_mode<synchronous>, transform_indices = @transform_2, window_bounds = array<i64: 1, 128>}, {transform_indices = @transform_3, window_bounds = array<i64: 1, 16, 128>}]} {
    %c0 = arith.constant 0 : index
    %c0_0 = arith.constant 0 : index
    %c0_1 = arith.constant 0 : index
    %0 = vector.load %arg2[%c0, %c0_0, %c0_1] : memref<1x16x12xf32, #tpu.memory_space<vmem>>, vector<1x16x12xf32>
    %1 = vector.shape_cast %0 : vector<1x16x12xf32> to vector<16x12xf32>
    %c0_2 = arith.constant 0 : index
    %c0_3 = arith.constant 0 : index
    %2 = vector.load %arg3[%c0_2, %c0_3] : memref<12x128xf32, #tpu.memory_space<vmem>>, vector<12x128xf32>
    %cst = arith.constant dense<0.000000e+00> : vector<16x128xf32>
    %3 = tpu.matmul %1, %2, %cst {dimension_numbers = #tpu.dot_dimension_numbers<[1], [0], [0], [1], [0, 0, 1, 1], [], []>} : vector<16x12xf32>, vector<12x128xf32>, vector<16x128xf32> -> vector<16x128xf32>
    %c0_4 = arith.constant 0 : index
    %c0_5 = arith.constant 0 : index
    %4 = vector.load %arg4[%c0_4, %c0_5] : memref<1x128xf32, #tpu.memory_space<vmem>>, vector<1x128xf32>
    %5 = vector.broadcast %4 : vector<1x128xf32> to vector<16x128xf32>
    %6 = arith.addf %3, %5 : vector<16x128xf32>
    %7 = arith.negf %6 : vector<16x128xf32>
    %8 = math.exp %7 : vector<16x128xf32>
    %cst_6 = arith.constant 1.000000e+00 : f32
    %9 = vector.broadcast %cst_6 : f32 to vector<16x128xf32>
    %10 = arith.addf %9, %8 : vector<16x128xf32>
    %11 = arith.divf %9, %10 : vector<16x128xf32>
    %12 = arith.mulf %6, %11 : vector<16x128xf32>
    %c0_7 = arith.constant 0 : index
    %c0_8 = arith.constant 0 : index
    %c0_9 = arith.constant 0 : index
    %13 = vector.load %arg5[%c0_7, %c0_8, %c0_9] : memref<1x16x128xf32, #tpu.memory_space<vmem>>, vector<1x16x128xf32>
    %14 = vector.shape_cast %13 : vector<1x16x128xf32> to vector<16x128xf32>
    %15 = vector.shape_cast %12 : vector<16x128xf32> to vector<1x16x128xf32>
    tpu.vector_store %arg5[%c0_7, %c0_8, %c0_9], %15 {strides = array<i32>} : memref<1x16x128xf32, #tpu.memory_space<vmem>>, vector<1x16x128xf32>,
    return
  }
  func.func @transform_0(%arg0: i32, %arg1: i32) -> (i32, i32, i32) {
    %c0_i32 = arith.constant 0 : i32
    %c0_i32_0 = arith.constant 0 : i32
    return %arg0, %arg1, %c0_i32 : i32, i32, i32
  }
  func.func @transform_1(%arg0: i32, %arg1: i32) -> (i32, i32) {
    %c0_i32 = arith.constant 0 : i32
    %c0_i32_0 = arith.constant 0 : i32
    %c0_i32_1 = arith.constant 0 : i32
    return %c0_i32, %c0_i32_0 : i32, i32
  }
  func.func @transform_2(%arg0: i32, %arg1: i32) -> (i32, i32) {
    %c0_i32 = arith.constant 0 : i32
    %c0_i32_0 = arith.constant 0 : i32
    %c0_i32_1 = arith.constant 0 : i32
    return %c0_i32, %c0_i32_0 : i32, i32
  }
  func.func @transform_3(%arg0: i32, %arg1: i32) -> (i32, i32, i32) {
    %c0_i32 = arith.constant 0 : i32
    %c0_i32_0 = arith.constant 0 : i32
    return %arg0, %arg1, %c0_i32 : i32, i32, i32
  }
}

</mosaic_0001>

<bundles_post_ra>
// kernel: tpu_custom_call.1
= control target key start
LH: loop header
LB: loop body
LE: loop exit
PB: predicated region body
PF: predicated region fallthrough
CT: control target
= control target key end

     0   :  { %8 = vsyncpa [#allocation3], 0  ;;  %s729_s0 = inlined_call_operand.vmem [shape: f32[2,16,12], index: 0, kind: input, shape index: {}]   ;;  %s730_s1 = inlined_call_operand.vmem [shape: f32[12,128], index: 1, kind: input, shape index: {}]   ;;  %s731_s2 = inlined_call_operand.vmem [shape: f32[1,128], index: 2, kind: input, shape index: {}]   ;;  %s732_s3 = inlined_call_operand.hbm [shape: f32[2,16,128], index: 3, kind: output, shape index: {}]  }
   0x1   :  { %10 = vsyncpa [#allocation3 + $0x1], 0  ;;  %s606_s12 = smov 0   ;;  %s608_s13 = smov 0  }
   0x2   :  { %s610_s14 = smov 0   ;;  %s612_s15 = smov 0  }
   0x3   :  { %s614_s16 = smov 0   ;;  %s616_s17 = smov 0  }
   0x4 LB: > { %s408_s18 = sadd.s32 4294967295, %s581_s17   ;;  %s409_s19 = sadd.s32 4294967294, %s581_s17   ;;  %s581_s17 = sphi %s616_s17, %s16_s17   ;;  %s577_s16 = sphi %s614_s16, %s739_s16   ;;  %s573_s15 = sphi %s612_s15, %s738_s15   ;;  %s569_s14 = sphi %s610_s14, %s737_s14   ;;  %s565_s13 = sphi %s608_s13, %s736_s13   ;;  %s561_s12 = sphi %s606_s12, %s735_s12  }
   0x5   : > { %s28_s20 = sadd.s32 1, %s577_s16  ;;  %s107_s21 = sadd.s32 1, %s569_s14 }
   0x6   : > { %p30_p0 = scmp.ge.s32.totalorder %s28_s20, 2  ;;  %p117_p1 = scmp.ne.s32.totalorder %s569_s14, %s565_s13 }
   0x7   : > { %p118_p2 = scmp.eq.s32.totalorder %s408_s18, 1  ;;  %p123_p3 = scmp.ne.s32.totalorder %s565_s13, %s561_s12 }
   0x8   : > { %s741_s20 = smov (%p30_p0, %s28_s20), 0  ;;  %p124_p5 = scmp.eq.s32.totalorder %s409_s19, 1 }
   0x9   : > { %p646_p4 = por %p118_p2, %p117_p1  ;;  %s102_s23 = ssub.s32 %s577_s16, %s741_s20 }
   0xa   : > { %p412_p6 = scmp.ge.s32.totalorder %s581_s17, 1  ;;  %p105_p7 = scmp.eq.s32.totalorder %s102_s23, 0 }
   0xb   : > { %p653_p8 = por %p124_p5, %p123_p3  ;;  %p161_p9 = scmp.lt.s32.totalorder %s581_s17, 3 }
   0xc   : > { %s659_s25 = scalar_select %p105_p7, %s569_s14, %s107_s21  }
   0xd   : > { %p162_p10 = pnand %p412_p6, %p161_p9 }
   0xe   : > { %p190_p11 = scmp.lt.s32.totalorder (!%p162_p10), %s573_s15, 1  ;;  %s186_s10 = sand.u32 (!%p162_p10), 1, %s565_s13  }
   0xf   : > { %165 = sbr.rel (%p162_p10) target bundleno = 271 (0x10f), region = 32  ;;  %s413_s11 = sshll.u32 (!%p162_p10), %s186_s10, 4 }
  0x10   : > { %s188_s18 = scalar_lea.vmem (!%p162_p10), [#allocation2], %s413_s11  ;;  %s428_s21 = sshll.u32 (!%p162_p10), %s573_s15, 8 }
  0x11   : > { %s329_s19 = sshll.u32 (!%p162_p10), %s188_s18, 4  ;;  %s682_s27 = scalar_lea.hbm (!%p162_p10), %s732_s3, %s428_s21  ;;  %s677_s19 = int_to_ptr.vmem [resolvable:$true] %s329_s19 }
  0x12   : > { %s684_s28 = scalar_lea.sflag (!%p162_p10), [#allocation3], %s186_s10  ;;  %s505_s29 = scalar_lea.vmem (!%p162_p10), %s677_s19, 256 }
  0x13   : > { %p506_p12 = scmp.ne.s32.totalorder (!%p162_p10), %s677_s19, %s505_s29 }
  0x14   : > { %v203_v0 = vld [vmem:[%s730_s1 + $0x8] sm:$0xf]  ;;  %vm218_vm0 = vcmask 1043456   ;;  %v202_v1 = vld [vmem:[%s730_s1] sm:$0xff]  ;;  %s191_s30 = scalar_select %p190_p11, %s573_s15, 1  ;;  %vm211_vm1 = vcmask 97280  }
  0x15   : > { %433 = vmatprep.subr.msk.mxu0 %vm218_vm0, %v203_v0  ;;  %v416_v4 = vld [vmem:[%s731_s2] ss:$0 sm:$0xff]  ;;  %p507_p13 = pnand %p506_p12, %p646_p4  ;;  %s583_s15 = smov [#allocation2]  }
  0x16   : > { %434 = vmatpush3.msk.msra.mxu0 %vm218_vm0, %v203_v0  ;;  %s427_s4 = sshll.u32 %s191_s30, 4  ;;  %s509_s30 = sshll.u32 %s583_s15, 4  ;;  %s510_s30 = int_to_ptr.vmem [resolvable:$false] %s509_s30 }
  0x17   : > { %435 = vmatprep.subr.mxu0 %v202_v1  ;;  %s197_s7 = scalar_lea.vmem %s729_s0, %s427_s4  ;;  %p508_p0 = pneg %p507_p13 }
  0x18   : > { %436 = vmatpush3.msra.mxu0 %v202_v1  ;;  %v200_v2 = vld [vmem:[%s197_s7] sm:$0xff]  ;;  %v201_v3 = vld [vmem:[%s197_s7 + $0x8] sm:$0xff]  ;;  %s511_s4 = scalar_lea.vmem %s510_s30, 512  ;;  %p512_p1 = scmp.lt.s32.totalorder %s677_s19, %s510_s30 }
  0x19   : > { %437 = vmatprep.mubr.msk.f32.mxu0 %vm211_vm1, %v200_v2  ;;  %p513_p2 = scmp.lt.s32.totalorder %s511_s4, %s505_s29 }
  0x1a   : > { %438 = vmatmul.mubr.msk.f32.vlgmr.msra.gmra.mxu0 %vm211_vm1, %v201_v3 }
  0x1b   : > { %p514_p3 = por %p513_p2, %p512_p1 }
  0x1d   : > { %p515_p5 = pnand %p514_p3, %p508_p0 }
  0xda   : > { %v439_v5 = vpop.f32.mrf.mxu0 }
  0xdb   : > { %v294_v6 = vadd.f32 %v439_v5, %v416_v4 }
  0xdc   : > { %v288_v7 = vpop.f32.mrf.mxu0 }
  0xdd   : > { %v421_v8 = vmul.f32 -1.442695, %v294_v6  ;;  %v289_v9 = vadd.f32 %v416_v4, %v288_v7 }
  0xdf   : > { %497 = vpow2.f32 %v421_v8  ;;  %v420_v10 = vmul.f32 -1.442695, %v289_v9 }
  0xe1   : > { %499 = vpow2.f32 %v420_v10 }
  0xec   : > { %v498_v11 = vpop.eup %497 }
  0xed   : > { %v304_v12 = vadd.f32 1.0, %v498_v11 }
  0xee   : > { %v500_v13 = vpop.eup %499 }
  0xef   : > { %501 = vrcp.f32 %v304_v12  ;;  %v303_v14 = vadd.f32 1.0, %v500_v13 }
  0xf1   : > { %503 = vrcp.f32 %v303_v14 }
  0xfc   : > { %v502_v15 = vpop.eup %501 }
  0xfd   : > { %v310_v16 = vmul.f32 %v502_v15, %v294_v6 }
  0xfe   : > { %v504_v17 = vpop.eup %503 }
  0xff   : > { %312 = vst [vmem:[%s188_s18 + $0x8] sm:$0xff] %v310_v16  ;;  %v309_v18 = vmul.f32 %v504_v17, %v289_v9 }
 0x101   : > { %311 = vst [vmem:[%s188_s18] sm:$0xff] %v309_v18 }
 0x102   : > { %518 = shalt.err (!%p515_p5)
}
 0x103   : > { %s519_s5 = scalar_lea.hbm %s682_s27, 256  ;;  %s523_s8 = scalar_lea.hbm %s732_s3, 512 }
 0x104   : > { %p520_p6 = scmp.ne.s32.totalorder %s682_s27, %s519_s5  ;;  %p524_p10 = scmp.lt.s32.totalorder %s682_s27, %s732_s3 }
 0x105   : > { %p525_p11 = scmp.lt.s32.totalorder %s523_s8, %s519_s5 }
 0x106   : > { %p521_p7 = pnand %p520_p6, %p646_p4 }
 0x107   : > { %p526_p12 = por %p525_p11, %p524_p10 }
 0x108   : > { %p522_p9 = pneg %p521_p7 }
 0x10a   : > { %p527_p13 = pnand %p526_p12, %p522_p9 }
 0x10c   : > { %530 = shalt.err (!%p527_p13)
}
 0x10d   : > { %s584_s11 = smov 128   ;;  %s585_s18 = smov 8  }
 0x10e   : > { %440 = dma.vmem_to_hbm [thread:$0]  (%p646_p4), %s677_s19, 256, %s682_s27, %s684_s28, %s584_s11, %s584_s11, %s585_s18  }
 0x10f PF: > { %p446_p0 = scmp.ge.s32.totalorder %s581_s17, 2  ;;  %s344_s21 = sand.u32 1, %s561_s12  }
 0x110   : > { %s345_s23 = scalar_lea.sflag [#allocation3], %s344_s21 }
 0x111   : > { %p443_p1 = pnand %p446_p0, %p653_p8 }
 0x113   : > { %p444_p2 = pneg %p443_p1 }
 0x115   : > { %556 = dma.done.wait (%p444_p2), %s345_s23, 256  }
 0x116   : > { %558 = vsyncadd (%p444_p2), %s345_s23, 4294967040  ;;  %s16_s17 = sadd.s32 1, %s581_s17   ;;  %s735_s12 = smov %s565_s13 }
 0x117   : > { %p13_p3 = scmp.ge.s32.totalorder %s16_s17, 4   ;;  %s736_s13 = smov %s569_s14 }
 0x118   : > { %s737_s14 = smov %s659_s25  ;;  %s738_s15 = smov %s577_s16 }
 0x119   : > { %s739_s16 = smov %s741_s20  ;;  %15 = sbr.rel (!%p13_p3) target bundleno = 4 (0x4), region = 67 }
 0x11e   :  { %350 = vsyncpa [#allocation3], 1 }
 0x11f   :  { %352 = vsyncpa [#allocation3 + $0x1], 1 }

</bundles_post_ra>
